<compile_context>
chip_gen: v6e
topology: v6e:2x2x1
jax: 0.10.0
libtpu: 0.0.40
codegen_flags: <defaults>
</compile_context>

<pallas_src>
import jax
import jax.numpy as jnp
from jax.experimental import pallas as pl
from jax.experimental.pallas import tpu as pltpu


def _linear_kernel(x_ref, w_ref, b_ref, o_ref):
    # Hot path: MXU matmul (contraction on last dim of x, first dim of w) + bias.
    x = x_ref[...]                      # (tb, D_in)
    w = w_ref[...]                      # (D_in, D_out)  -- already transposed
    b = b_ref[...]                      # (1, D_out)
    acc = jnp.dot(x, w, preferred_element_type=jnp.float32)   # (tb, D_out)
    o_ref[...] = (acc + b).astype(o_ref.dtype)


def _round_up(n, m):
    return ((n + m - 1) // m) * m


def composite_type_forward(x, weight, bias):
    """x: (B, D_in); weight: (D_out, D_in) PyTorch-style; bias: (D_out,) -> (B, D_out)."""
    B, D_in = x.shape
    D_out = weight.shape[0]

    # One-time layout prep (outside the kernel): contraction dim lane-major for
    # the LHS, D_out lane-major for the RHS/result; bias kept 2-D lane-aligned.
    w_t = weight.T                      # (D_in, D_out)
    bias2d = bias.reshape(1, D_out)

    # Row tile: multiple of 8 sublanes, capped so the grid amortizes launch
    # overhead when many rows (decode steps / beams) are stacked.
    tb = min(256, _round_up(B, 8))
    B_pad = _round_up(B, tb)
    if B_pad != B:
        x = jnp.pad(x, ((0, B_pad - B), (0, 0)))

    grid = (B_pad // tb,)

    out = pl.pallas_call(
        _linear_kernel,
        out_shape=jax.ShapeDtypeStruct((B_pad, D_out), x.dtype),
        grid_spec=pltpu.PrefetchScalarGridSpec(
            num_scalar_prefetch=0,
            grid=grid,
            in_specs=[
                pl.BlockSpec((tb, D_in), lambda i: (i, 0)),      # x rows tiled
                pl.BlockSpec((D_in, D_out), lambda i: (0, 0)),   # weight resident
                pl.BlockSpec((1, D_out), lambda i: (0, 0)),      # bias resident
            ],
            out_specs=pl.BlockSpec((tb, D_out), lambda i: (i, 0)),
        ),
        compiler_params=pltpu.CompilerParams(
            dimension_semantics=("parallel",),
        ),
    )(x, w_t, bias2d)

    if B_pad != B:
        out = out[:B]
    return out


if __name__ == "__main__":
    # Module hyperparameters (synthetic, deterministic).
    enc_hid_size = 32
    field_emb_size = 16
    n_productions = 12
    D_in = 2 * enc_hid_size + field_emb_size     # 80
    batch = 8

    key = jax.random.PRNGKey(0)
    kx, kw, kb, kx2 = jax.random.split(key, 4)

    # Deterministic parameter init (uniform like torch.nn.Linear default).
    bound = 1.0 / (D_in ** 0.5)
    weight = jax.random.uniform(kw, (n_productions, D_in), jnp.float32, -bound, bound)
    bias = jax.random.uniform(kb, (n_productions,), jnp.float32, -bound, bound)

    # Small batch (module-native shape).
    x = jax.random.normal(kx, (batch, D_in), jnp.float32)
    out = composite_type_forward(x, weight, bias)
    out = jax.block_until_ready(out)
    ref = x @ weight.T + bias
    assert out.shape == (batch, n_productions)
    assert jnp.allclose(out, ref, atol=1e-5, rtol=1e-5)

    # Larger stacked-rows batch to exercise the grid + padding path.
    big_batch = 300
    x_big = jax.random.normal(kx2, (big_batch, D_in), jnp.float32)
    out_big = composite_type_forward(x_big, weight, bias)
    out_big = jax.block_until_ready(out_big)
    ref_big = x_big @ weight.T + bias
    assert out_big.shape == (big_batch, n_productions)
    assert jnp.allclose(out_big, ref_big, atol=1e-5, rtol=1e-5)

    print("KERNEL_OK")
</pallas_src>

<mosaic_0001>
module attributes {stable_mosaic.version = 11 : i64} {
  func.func @_linear_kernel(%arg0: i32, %arg1: memref<8x80xf32, #tpu.memory_space<vmem>>, %arg2: memref<80x12xf32, #tpu.memory_space<vmem>>, %arg3: memref<1x12xf32, #tpu.memory_space<vmem>>, %arg4: memref<8x12xf32, #tpu.memory_space<vmem>>) attributes {dimension_semantics = [#tpu.dimension_semantics<parallel>], iteration_bounds = array<i64: 1>, scalar_prefetch = 0 : i64, scratch_operands = 0 : i64, tpu.core_type = #tpu.core_type<tc>, window_params = [{transform_indices = @transform_0, window_bounds = array<i64: 8, 80>}, {pipeline_mode = #tpu.pipeline_mode<synchronous>, transform_indices = @transform_1, window_bounds = array<i64: 80, 12>}, {pipeline_mode = #tpu.pipeline_mode<synchronous>, transform_indices = @transform_2, window_bounds = array<i64: 1, 12>}, {transform_indices = @transform_3, window_bounds = array<i64: 8, 12>}]} {
    %c0 = arith.constant 0 : index
    %c0_0 = arith.constant 0 : index
    %0 = vector.load %arg1[%c0, %c0_0] : memref<8x80xf32, #tpu.memory_space<vmem>>, vector<8x80xf32>
    %c0_1 = arith.constant 0 : index
    %c0_2 = arith.constant 0 : index
    %1 = vector.load %arg2[%c0_1, %c0_2] : memref<80x12xf32, #tpu.memory_space<vmem>>, vector<80x12xf32>
    %c0_3 = arith.constant 0 : index
    %c0_4 = arith.constant 0 : index
    %2 = vector.load %arg3[%c0_3, %c0_4] : memref<1x12xf32, #tpu.memory_space<vmem>>, vector<1x12xf32>
    %cst = arith.constant dense<0.000000e+00> : vector<8x12xf32>
    %3 = tpu.matmul %0, %1, %cst {dimension_numbers = #tpu.dot_dimension_numbers<[1], [0], [0], [1], [0, 0, 1, 1], [], []>} : vector<8x80xf32>, vector<80x12xf32>, vector<8x12xf32> -> vector<8x12xf32>
    %4 = vector.broadcast %2 : vector<1x12xf32> to vector<8x12xf32>
    %5 = arith.addf %3, %4 : vector<8x12xf32>
    %c0_5 = arith.constant 0 : index
    %c0_6 = arith.constant 0 : index
    %6 = vector.load %arg4[%c0_5, %c0_6] : memref<8x12xf32, #tpu.memory_space<vmem>>, vector<8x12xf32>
    tpu.vector_store %arg4[%c0_5, %c0_6], %5 {strides = array<i32>} : memref<8x12xf32, #tpu.memory_space<vmem>>, vector<8x12xf32>,
    return
  }
  func.func @transform_0(%arg0: i32) -> (i32, i32) {
    %c0_i32 = arith.constant 0 : i32
    %c0_i32_0 = arith.constant 0 : i32
    return %arg0, %c0_i32 : i32, i32
  }
  func.func @transform_1(%arg0: i32) -> (i32, i32) {
    %c0_i32 = arith.constant 0 : i32
    %c0_i32_0 = arith.constant 0 : i32
    %c0_i32_1 = arith.constant 0 : i32
    return %c0_i32, %c0_i32_0 : i32, i32
  }
  func.func @transform_2(%arg0: i32) -> (i32, i32) {
    %c0_i32 = arith.constant 0 : i32
    %c0_i32_0 = arith.constant 0 : i32
    %c0_i32_1 = arith.constant 0 : i32
    return %c0_i32, %c0_i32_0 : i32, i32
  }
  func.func @transform_3(%arg0: i32) -> (i32, i32) {
    %c0_i32 = arith.constant 0 : i32
    %c0_i32_0 = arith.constant 0 : i32
    return %arg0, %c0_i32 : i32, i32
  }
}

</mosaic_0001>

<bundles_post_ra>
// kernel: tpu_custom_call.1
= control target key start
LH: loop header
LB: loop body
LE: loop exit
PB: predicated region body
PF: predicated region fallthrough
CT: control target
= control target key end

     0   :  { %v184_v1 = vmov 0.0   ;;  %vm185_vm0 = vmmov 0   ;;  %s246_s0 = inlined_call_operand.vmem [shape: f32[8,80], index: 0, kind: input, shape index: {}]   ;;  %s247_s1 = inlined_call_operand.vmem [shape: f32[80,12], index: 1, kind: input, shape index: {}]   ;;  %s248_s2 = inlined_call_operand.vmem [shape: f32[1,12], index: 2, kind: input, shape index: {}]   ;;  %s249_s3 = inlined_call_operand.hbm [shape: f32[8,12], index: 3, kind: output, shape index: {}]  }
   0x1   :  { %v25_v0 = vld [vmem:[%s247_s1 + $0x48] sm:$0xff]  ;;  %136 = vmatprep.subr.mxu0 %v184_v1  ;;  %v24_v2 = vld [vmem:[%s247_s1 + $0x40] sm:$0xff]  ;;  %156 = vmatprep.mubr.msk.f32.mxu0 %vm185_vm0, %v184_v1  ;;  %v23_v3 = vld [vmem:[%s247_s1 + $0x38] sm:$0xff] }
   0x2   :  { %137 = vmatpush3.msra.mxu0 %v25_v0 }
   0x3   :  { %138 = vmatprep.subr.mxu0 %v184_v1 }
   0x4   :  { %139 = vmatpush3.msra.mxu0 %v24_v2 }
   0x5   :  { %8 = vsyncpa [#allocation3], 0  ;;  %140 = vmatprep.subr.mxu0 %v184_v1  ;;  %v22_v4 = vld [vmem:[%s247_s1 + $0x30] sm:$0xff]  ;;  %v21_v5 = vld [vmem:[%s247_s1 + $0x28] sm:$0xff]  ;;  %vm33_vm1 = vcmask 654336   ;;  %s186_s9 = smov [#allocation2]  }
   0x6   :  { %141 = vmatpush3.msra.mxu0 %v23_v3  ;;  %v20_v6 = vld [vmem:[%s247_s1 + $0x20] sm:$0xff]  ;;  %v19_v7 = vld [vmem:[%s247_s1 + $0x18] sm:$0xff]  ;;  %v18_v8 = vld [vmem:[%s247_s1 + $0x10] sm:$0xff]  ;;  %s115_s10 = sshll.u32 %s186_s9, 4  ;;  %vm107_vm2 = vcmask 97280   ;;  %s116_s10 = int_to_ptr.vmem [resolvable:$true] %s115_s10 }
   0x7   :  { %142 = vmatprep.subr.mxu0 %v184_v1  ;;  %v17_v9 = vld [vmem:[%s247_s1 + $0x8] sm:$0xff]  ;;  %v16_v10 = vld [vmem:[%s247_s1] sm:$0xff]  ;;  %s162_s1 = scalar_lea.vmem %s116_s10, 128  ;;  %p167_p1 = scmp.lt.s32.totalorder %s116_s10, %s116_s10 }
   0x8   :  { %143 = vmatpush3.msra.mxu0 %v22_v4  ;;  %v15_v11 = vld [vmem:[%s246_s0] sm:$0xff]  ;;  %p163_p0 = scmp.ne.s32.totalorder %s116_s10, %s162_s1  ;;  %p168_p2 = scmp.lt.s32.totalorder %s162_s1, %s162_s1 }
   0x9   :  { %144 = vmatprep.subr.mxu0 %v184_v1  ;;  %v123_v12 = vld [vmem:[%s248_s2] ss:$0 sm:$0xff] }
   0xa   :  { %145 = vmatpush3.msra.mxu0 %v21_v5  ;;  %p169_p3 = por %p168_p2, %p167_p1 }
   0xb   :  { %146 = vmatprep.subr.mxu0 %v184_v1 }
   0xc   :  { %147 = vmatpush3.msra.mxu0 %v20_v6  ;;  %p170_p4 = pnand %p169_p3, %p163_p0 }
   0xd   :  { %148 = vmatprep.subr.mxu0 %v184_v1 }
   0xe   :  { %149 = vmatpush3.msra.mxu0 %v19_v7 }
   0xf   :  { %150 = vmatprep.subr.mxu0 %v184_v1 }
  0x10   :  { %151 = vmatpush3.msra.mxu0 %v18_v8 }
  0x11   :  { %152 = vmatprep.subr.mxu0 %v184_v1 }
  0x12   :  { %153 = vmatpush3.msra.mxu0 %v17_v9 }
  0x13   :  { %154 = vmatprep.subr.mxu0 %v184_v1 }
  0x14   :  { %155 = vmatpush3.msra.mxu0 %v16_v10 }
  0x15   :  { %157 = vmatmul.mubr.msk.f32.vlgmr.msra.gmra.mxu0 %vm33_vm1, %v15_v11 }
  0xd5   :  { %v103_v13 = vpop.f32.mrf.mxu0 }
  0xd6   :  { %v104_v14 = vadd.f32 %v123_v12, %v103_v13 }
  0xd7   :  { %v158_v15 = vpop.f32.mrf.mxu0 }
  0xd8   :  { %108 = vst.msk [vmem:[#allocation2] sm:$0xff] %vm107_vm2, %v104_v14 }
  0xd9   :  { %173 = shalt.err (!%p170_p4)
}
  0xda   :  { %118 = dma.vmem_to_hbm [thread:$0]  %s116_s10, 128, %s249_s3, [#allocation3]  }
  0xdb   :  { %182 = dma.done.wait [#allocation3], 128  }
  0xdc   :  { %183 = vsyncadd [#allocation3], 4294967168 }
  0xdd   :  { %122 = vsyncpa [#allocation3], 1 }

</bundles_post_ra>
